<compile_context>
chip_gen: v6e
topology: v6e:2x2x1
jax: 0.10.0
libtpu: 0.0.40
codegen_flags: <defaults>
</compile_context>

<pallas_src>
import jax
import jax.numpy as jnp
import numpy as np
from jax.experimental import pallas as pl
from jax.experimental.pallas import tpu as pltpu


# ---------------------------------------------------------------------------
# Kernels
# ---------------------------------------------------------------------------
def _diff2_general_kernel(u_ref, w_ref, o_ref):
    """General per-index weights. u_ref: (TR, L); w_ref: (3, L) f32; o_ref: (TR, L)."""
    L = u_ref.shape[-1]
    u_raw = u_ref[...]
    w0 = w_ref[0:1, :]   # weight on u_m (broadcast over rows)
    w1 = w_ref[1:2, :]   # weight on u
    w2 = w_ref[2:3, :]   # weight on u_p
    # pltpu.roll needs non-negative shifts: torch.roll(u, -1) == roll by (L - 1).
    u_m = pltpu.roll(u_raw, shift=1, axis=1).astype(jnp.float32)
    u_p = pltpu.roll(u_raw, shift=L - 1, axis=1).astype(jnp.float32)
    u_c = u_raw.astype(jnp.float32)
    o_ref[...] = (u_m * w0 + u_c * w1 + u_p * w2).astype(o_ref.dtype)


def _make_uniform_kernel(coeff):
    """Uniform-spacing fast path: result = c * (u_m + u_p - 2*u), c folded in as a constant."""
    c = float(coeff)

    def kernel(u_ref, o_ref):
        L = u_ref.shape[-1]
        u_raw = u_ref[...]
        u_m = pltpu.roll(u_raw, shift=1, axis=1)
        u_p = pltpu.roll(u_raw, shift=L - 1, axis=1)
        lap = (u_m.astype(jnp.float32) + u_p.astype(jnp.float32)
               - 2.0 * u_raw.astype(jnp.float32))
        o_ref[...] = (jnp.float32(c) * lap).astype(o_ref.dtype)

    return kernel


# ---------------------------------------------------------------------------
# Host-side helpers
# ---------------------------------------------------------------------------
def make_weights_all(z_vector):
    """Replicates Order2_Diff2_Unstructure_Period.__init__ weight construction (float32)."""
    z_vector = z_vector.astype(jnp.float32)
    n = z_vector.shape[0]
    dz = z_vector[1] - z_vector[0]
    dz_m = jnp.ones((n,), dtype=jnp.float32) * dz
    dz_p = jnp.ones((n,), dtype=jnp.float32) * dz
    w0 = 2.0 / dz_m / (dz_m + dz_p)
    w2 = 2.0 / dz_p / (dz_m + dz_p)
    w1 = -w0 - w2
    return jnp.stack([w0, w1, w2], axis=1)   # (L, 3) — matches self.weights_all


def _vmem_capacity_bytes():
    try:
        info = pltpu.get_tpu_info()
        cap = getattr(info, "vmem_capacity_bytes", None)
        if cap:
            return int(cap)
    except Exception:
        pass
    return 64 * 1024 * 1024   # conservative default (v7x per-TC VMEM)


def _uniform_coeff(weights_all):
    """Return scalar c if weights are concretely [c, -2c, c] for every index, else None."""
    try:
        w = np.asarray(jax.device_get(weights_all), dtype=np.float64)
    except Exception:
        return None               # traced / abstract -> use the general kernel
    if w.ndim != 2 or w.shape[1] != 3 or w.shape[0] < 1:
        return None
    c = w[0, 0]
    if (np.allclose(w[:, 0], c) and np.allclose(w[:, 2], c)
            and np.allclose(w[:, 1], -2.0 * c)):
        return float(c)
    return None


def _choose_tile_rows(R, target, sublane):
    """Row-tile size: multiple of sublane, >=2 blocks when possible, prefer a divisor of R."""
    if R <= sublane:
        return R
    target = max(sublane, min(int(target), R))
    # Guarantee at least 2 row blocks so the "parallel" grid axis can shard across
    # v7x's 2 TensorCores (harmless ~0.35 us extra step on single-TC v5e/v6e).
    half = (pl.cdiv(R, 2) // sublane) * sublane
    if half >= sublane:
        target = min(target, half)
    target = (target // sublane) * sublane
    # Prefer an exact divisor of R near the target: no masked partial edge block.
    t = target
    while t >= sublane:
        if R % t == 0:
            return t
        t -= sublane
    return target   # fall back to a masked edge block (still correct: rolls are lane-only)


# ---------------------------------------------------------------------------
# Public wrapper
# ---------------------------------------------------------------------------
def order2_diff2_unstructure_period(u, weights_all, diff_dim=None, *,
                                    tile_bytes=None, use_uniform=None):
    """Periodic second derivative of u along `diff_dim` with per-index 3-point weights.

    u: any rank >= 1; diff_dim defaults to the last axis (total_dim=2, diff_dim=2 layout).
    weights_all: (L, 3) where L = u.shape[diff_dim].  Returns an array like u.
    """
    if diff_dim is None:
        diff_dim = u.ndim - 1
    axis = int(diff_dim)
    L = u.shape[axis]
    if weights_all.shape != (L, 3):
        raise ValueError(f"weights_all must be ({L}, 3), got {weights_all.shape}")

    # Move the differentiated axis to lanes; flatten everything else to rows.
    u_t = jnp.moveaxis(u, axis, -1)            # no-op when axis is already last
    lead_shape = u_t.shape[:-1]
    R = int(np.prod(lead_shape)) if lead_shape else 1
    u2 = u_t.reshape(R, L)

    itemsize = np.dtype(u.dtype).itemsize
    vmem_cap = _vmem_capacity_bytes()
    if tile_bytes is None:
        # ~vmem/16 per input tile: ~4 MiB on v7x (64 MiB), ~8 MiB on v5e/v6e (128 MiB).
        tile_bytes = max(512 * 1024, min(16 * 1024 * 1024, vmem_cap // 16))
    row_bytes = L * itemsize
    sublane = 16 if itemsize == 2 else (32 if itemsize == 1 else 8)
    target_rows = max(1, tile_bytes // row_bytes)
    tile_rows = _choose_tile_rows(R, target_rows, sublane)
    grid = (pl.cdiv(R, tile_rows),)

    vmem_limit = int(max(32 * 1024 * 1024, min(vmem_cap * 3 // 4, 96 * 1024 * 1024)))
    compiler_params = pltpu.CompilerParams(
        dimension_semantics=("parallel",),      # shard row blocks across v7x's 2 TCs
        vmem_limit_bytes=vmem_limit,
    )

    out_shape = jax.ShapeDtypeStruct((R, L), u.dtype)
    u_spec = pl.BlockSpec((tile_rows, L), lambda i: (i, 0))
    out_spec = pl.BlockSpec((tile_rows, L), lambda i: (i, 0))

    coeff = None
    if use_uniform is not False:
        coeff = _uniform_coeff(weights_all)
    if use_uniform is True and coeff is None:
        raise ValueError("use_uniform=True but weights are not concretely uniform")

    if coeff is not None:
        cost = pl.CostEstimate(flops=4 * R * L, transcendentals=0,
                               bytes_accessed=2 * R * L * itemsize)
        out2 = pl.pallas_call(
            _make_uniform_kernel(coeff),
            out_shape=out_shape,
            grid_spec=pltpu.PrefetchScalarGridSpec(
                num_scalar_prefetch=0, grid=grid,
                in_specs=[u_spec], out_specs=out_spec),
            compiler_params=compiler_params,
            cost_estimate=cost,
        )(u2)
    else:
        w_t = weights_all.T.astype(jnp.float32)   # (3, L), kept in f32
        cost = pl.CostEstimate(flops=6 * R * L, transcendentals=0,
                               bytes_accessed=2 * R * L * itemsize + 3 * L * 4)
        out2 = pl.pallas_call(
            _diff2_general_kernel,
            out_shape=out_shape,
            grid_spec=pltpu.PrefetchScalarGridSpec(
                num_scalar_prefetch=0, grid=grid,
                in_specs=[u_spec,
                          pl.BlockSpec((3, L), lambda i: (0, 0))],
                out_specs=out_spec),
            compiler_params=compiler_params,
            cost_estimate=cost,
        )(u2, w_t)

    out_t = out2.reshape(u_t.shape)
    return jnp.moveaxis(out_t, -1, axis)


# ---------------------------------------------------------------------------
# Self-test
# ---------------------------------------------------------------------------
if __name__ == "__main__":
    key = jax.random.PRNGKey(0)
    k1, k2 = jax.random.split(key)

    # ---- Test 1: total_dim=2, diff_dim=2 (z last), module-style z_vector (tiny dz) ----
    V, X, Z = 2, 8, 128
    z_vec = jnp.linspace(0.0, 1.0, Z, dtype=jnp.float32)      # uniform spacing, like __init__
    w_all = make_weights_all(z_vec)                           # (Z, 3)
    u = jax.random.normal(k1, (V, X, Z), dtype=jnp.float32)

    result = jax.block_until_ready(
        order2_diff2_unstructure_period(u, w_all, diff_dim=2))
    assert result.shape == u.shape and result.dtype == u.dtype

    u64 = np.asarray(u, dtype=np.float64)
    w64 = np.asarray(w_all, dtype=np.float64)
    ref1 = (np.roll(u64, 1, axis=2) * w64[:, 0]
            + u64 * w64[:, 1]
            + np.roll(u64, -1, axis=2) * w64[:, 2])
    # Weights are ~1/dz^2 ~ 1.6e4, so the 3-point stencil cancels catastrophically in f32;
    # allow a few ULPs of the intermediate magnitude as absolute slack.
    scale = float(np.max(np.abs(w64)) * np.max(np.abs(u64)))
    atol1 = 64.0 * np.finfo(np.float32).eps * scale
    np.testing.assert_allclose(np.asarray(result, dtype=np.float64), ref1,
                               rtol=1e-4, atol=atol1)

    # ---- Test 2: total_dim=3, diff_dim=2 (y axis), well-conditioned dz, general kernel ----
    V2, X2, Y2, Z2 = 2, 4, 128, 8
    y_vec = jnp.arange(Y2, dtype=jnp.float32) * 0.5
    w_all2 = make_weights_all(y_vec)                          # (Y2, 3)
    u3 = jax.random.normal(k2, (V2, X2, Y2, Z2), dtype=jnp.float32)

    result2 = jax.block_until_ready(
        order2_diff2_unstructure_period(u3, w_all2, diff_dim=2, use_uniform=False))
    assert result2.shape == u3.shape and result2.dtype == u3.dtype

    u3_64 = np.asarray(u3, dtype=np.float64)
    w2_64 = np.asarray(w_all2, dtype=np.float64)[None, None, :, None, :]   # broadcast on axis 2
    ref2 = (np.roll(u3_64, 1, axis=2) * w2_64[..., 0]
            + u3_64 * w2_64[..., 1]
            + np.roll(u3_64, -1, axis=2) * w2_64[..., 2])
    np.testing.assert_allclose(np.asarray(result2, dtype=np.float64), ref2,
                               rtol=1e-4, atol=1e-3)

    print("KERNEL_OK")
</pallas_src>

<mosaic_0001>
module attributes {stable_mosaic.version = 11 : i64} {
  func.func @kernel(%arg0: i32, %arg1: memref<8x128xf32, #tpu.memory_space<vmem>>, %arg2: memref<8x128xf32, #tpu.memory_space<vmem>>) attributes {dimension_semantics = [#tpu.dimension_semantics<parallel>], iteration_bounds = array<i64: 2>, scalar_prefetch = 0 : i64, scratch_operands = 0 : i64, tpu.core_type = #tpu.core_type<tc>, window_params = [{transform_indices = @transform_0, window_bounds = array<i64: 8, 128>}, {transform_indices = @transform_1, window_bounds = array<i64: 8, 128>}]} {
    %c0 = arith.constant 0 : index
    %c0_0 = arith.constant 0 : index
    %0 = vector.load %arg1[%c0, %c0_0] : memref<8x128xf32, #tpu.memory_space<vmem>>, vector<8x128xf32>
    %c1_i32 = arith.constant 1 : i32
    %1 = tpu.dynamic_rotate %0 by %c1_i32 dim 1 : vector<8x128xf32>, i32 -> vector<8x128xf32>
    %c127_i32 = arith.constant 127 : i32
    %2 = tpu.dynamic_rotate %0 by %c127_i32 dim 1 : vector<8x128xf32>, i32 -> vector<8x128xf32>
    %3 = arith.addf %1, %2 : vector<8x128xf32>
    %cst = arith.constant 2.000000e+00 : f32
    %4 = vector.broadcast %cst : f32 to vector<8x128xf32>
    %5 = arith.mulf %4, %0 : vector<8x128xf32>
    %6 = arith.subf %3, %5 : vector<8x128xf32>
    %cst_1 = arith.constant 1.612900e+04 : f32
    %7 = vector.broadcast %cst_1 : f32 to vector<8x128xf32>
    %8 = arith.mulf %7, %6 : vector<8x128xf32>
    %c0_2 = arith.constant 0 : index
    %c0_3 = arith.constant 0 : index
    %9 = vector.load %arg2[%c0_2, %c0_3] : memref<8x128xf32, #tpu.memory_space<vmem>>, vector<8x128xf32>
    tpu.vector_store %arg2[%c0_2, %c0_3], %8 {strides = array<i32>} : memref<8x128xf32, #tpu.memory_space<vmem>>, vector<8x128xf32>,
    return
  }
  func.func @transform_0(%arg0: i32) -> (i32, i32) {
    %c0_i32 = arith.constant 0 : i32
    %c0_i32_0 = arith.constant 0 : i32
    return %arg0, %c0_i32 : i32, i32
  }
  func.func @transform_1(%arg0: i32) -> (i32, i32) {
    %c0_i32 = arith.constant 0 : i32
    %c0_i32_0 = arith.constant 0 : i32
    return %arg0, %c0_i32 : i32, i32
  }
}

</mosaic_0001>

<bundles_post_ra>
// kernel: tpu_custom_call.1
= control target key start
LH: loop header
LB: loop body
LE: loop exit
PB: predicated region body
PF: predicated region fallthrough
CT: control target
= control target key end

     0   :  { %6 = vsyncpa [#allocation3], 0  ;;  %s535_s0 = inlined_call_operand.hbm [shape: f32[16,128], index: 0, kind: input, shape index: {}]   ;;  %s536_s1 = inlined_call_operand.hbm [shape: f32[16,128], index: 1, kind: output, shape index: {}]  }
   0x1   :  { %8 = vsyncpa [#allocation3 + $0x1], 0 }
   0x2   :  { %9 = vsyncpa [#allocation4], 0 }
   0x3   :  { %11 = vsyncpa [#allocation4 + $0x1], 0  ;;  %s394_s6 = smov 0   ;;  %s396_s7 = smov 0  }
   0x4   :  { %s398_s8 = smov 0   ;;  %s400_s9 = smov 0  }
   0x5 LB: > { %s415_s10 = sadd.s32 4294967295, %s378_s9   ;;  %s226_s11 = sadd.s32 4294967294, %s378_s9   ;;  %s378_s9 = sphi %s400_s9, %s553_s9   ;;  %s374_s8 = sphi %s398_s8, %s552_s8   ;;  %s370_s7 = sphi %s396_s7, %s551_s7   ;;  %s366_s6 = sphi %s394_s6, %s550_s6  }
   0x6   : > { %s419_s12 = sadd.s32 1, %s378_s9   ;;  %s24_s13 = sadd.s32 1, %s374_s8 }
   0x7   : > { %s21_s14 = ssub.s32 %s378_s9, %s419_s12  ;;  %p31_p0 = scmp.ne.s32.totalorder %s374_s8, %s370_s7 }
   0x8   : > { %p22_p1 = scmp.eq.s32.totalorder %s21_s14, 0  ;;  %p32_p2 = scmp.eq.s32.totalorder %s378_s9, 0 }
   0x9   : > { %p37_p3 = scmp.ne.s32.totalorder %s370_s7, %s366_s6  ;;  %p38_p4 = scmp.eq.s32.totalorder %s415_s10, 0 }
   0xa   : > { %s431_s15 = scalar_select %p22_p1, %s374_s8, %s24_s13  }
   0xb   : > { %p433_p5 = por %p32_p2, %p31_p0  ;;  %p437_p6 = por %p38_p4, %p37_p3 }
   0xc   : > { %p61_p7 = scmp.eq.s32.totalorder %s415_s10, 1  ;;  %p67_p8 = scmp.eq.s32.totalorder %s226_s11, 1 }
   0xd   : > { %s540_s17 = scalar_select %p437_p6, 1, 0 }
   0xe   : > { %p250_p10 = scmp.lt.s32.totalorder %s378_s9, 2  ;;  %p444_p11 = por %p61_p7, %p31_p0 }
   0xf   : > { %p448_p12 = por %p67_p8, %p37_p3  ;;  %s87_s20 = sand.u32 1, %s374_s8  }
  0x10   : > { %s541_s18 = scalar_select %p444_p11, 1, 0 }
  0x11   : > { %s542_s19 = scalar_select %p448_p12, 1, 0 }
  0x12   : > { %s230_s21 = sshll.u32 %s378_s9, 7  ;;  %s229_s22 = sshll.u32 %s87_s20, 3 }
  0x13   : > { %s457_s25 = scalar_lea.hbm %s535_s0, %s230_s21  ;;  %s91_s26 = scalar_lea.vmem [#allocation2], %s229_s22 }
  0x14   : > { %s98_s27 = sshll.u32 %s91_s26, 4  ;;  %p461_p13 = pnand %p250_p10, %p433_p5  ;;  %s465_s27 = int_to_ptr.vmem [resolvable:$true] %s98_s27 }
  0x15   : > { %s88_s29 = scalar_lea.sflag [#allocation3], %s87_s20  ;;  %s286_s30 = scalar_lea.hbm %s457_s25, 128 }
  0x16   : > { %p287_p2 = scmp.ne.s32.totalorder %s457_s25, %s286_s30  ;;  %p288_p3 = pneg %p461_p13 }
  0x17   : > { %s291_s4 = scalar_lea.hbm %s535_s0, 256  ;;  %p292_p5 = scmp.lt.s32.totalorder %s457_s25, %s535_s0 }
  0x18   : > { %p289_p4 = pnand %p288_p3, %p287_p2  ;;  %p293_p8 = scmp.lt.s32.totalorder %s291_s4, %s286_s30 }
  0x1a   : > { %p290_p7 = pneg %p289_p4  ;;  %p294_p10 = por %p293_p8, %p292_p5 }
  0x1c   : > { %p295_p9 = pnand %p294_p10, %p290_p7 }
  0x1e   : > { %298 = shalt.err (!%p295_p9)
}
  0x1f   : > { %s299_s13 = scalar_lea.vmem %s465_s27, 128  ;;  %s380_s14 = smov [#allocation2]  }
  0x20   : > { %p300_p0 = scmp.ne.s32.totalorder %s465_s27, %s299_s13  ;;  %s304_s16 = sshll.u32 %s380_s14, 4  ;;  %s305_s16 = int_to_ptr.vmem [resolvable:$false] %s304_s16 }
  0x21   : > { %s306_s20 = scalar_lea.vmem %s305_s16, 256  ;;  %p307_p4 = scmp.lt.s32.totalorder %s465_s27, %s305_s16 }
  0x22   : > { %p302_p1 = pnand %p300_p0, %p288_p3  ;;  %p308_p12 = scmp.lt.s32.totalorder %s306_s20, %s299_s13 }
  0x24   : > { %p303_p2 = pneg %p302_p1  ;;  %p309_p11 = por %p308_p12, %p307_p4 }
  0x26   : > { %p310_p6 = pnand %p309_p11, %p303_p2 }
  0x28   : > { %313 = shalt.err (!%p310_p6)
}
  0x29   : > { %245 = dma.hbm_to_vmem [thread:$0]  (!%p461_p13), %s457_s25, 128, %s465_s27, %s88_s29  }
  0x2a   : > { %p544_p9 = scmp.lt.s32.totalorder %s378_s9, 3  ;;  %p545_p7 = scmp.ge.s32.totalorder %s378_s9, 1 }
  0x2c   : > { %p104_p0 = pnand %p545_p7, %p544_p9 }
  0x2d   : > { %s492_s21 = sand.u32 (!%p104_p0), 1, %s370_s7   ;;  %p546_p6 = scmp.ne.s32.totalorder (!%p104_p0), %s540_s17, 0 }
  0x2e   : > { %107 = sbr.rel (%p104_p0) target bundleno = 191 (0xbf), region = 24  ;;  %s232_s22 = sshll.u32 (!%p104_p0), %s492_s21, 3 }
  0x2f   : > { %s110_s23 = scalar_lea.sflag (!%p104_p0), [#allocation3], %s492_s21  ;;  %s113_s24 = scalar_lea.vmem (!%p104_p0), [#allocation2], %s232_s22 }
  0x33   : > { %357 = dma.done.wait (%p546_p6), %s110_s23, 128  }
  0x34   : > { %359 = vsyncadd (%p546_p6), %s110_s23, 4294967168  ;;  %v132_v0 = vld [vmem:[%s113_s24] sm:$0xff]  ;;  %s381_s25 = smov 1   ;;  %s382_s26 = smov 127  }
  0x35   : > { %133 = vrot.lane.b32.xlu0 %v132_v0, %s381_s25  ;;  %v138_v2 = vmul.f32 2.0, %v132_v0  ;;  %s235_s27 = sshll.u32 %s415_s10, 7  ;;  %s131_s28 = scalar_lea.vmem [#allocation5], %s232_s22 }
  0x36   : > { %s156_s29 = sshll.u32 %s131_s28, 4  ;;  %s154_s2 = scalar_lea.hbm %s536_s1, %s235_s27  ;;  %s157_s29 = int_to_ptr.vmem [resolvable:$true] %s156_s29 }
  0x37   : > { %s143_s3 = scalar_lea.sflag [#allocation4], %s492_s21  ;;  %s314_s4 = scalar_lea.vmem %s157_s29, 128 }
  0x38   : > { %p315_p11 = scmp.ne.s32.totalorder %s157_s29, %s314_s4  ;;  %p547_p12 = scmp.ne.s32.totalorder %s541_s18, 0 }
  0x39   : > { %135 = vrot.lane.b32.xlu0 %v132_v0, %s382_s26  ;;  %s383_s5 = smov [#allocation5]  }
  0x3a   : > { %p316_p13 = pnand %p315_p11, %p547_p12  ;;  %s318_s11 = sshll.u32 %s383_s5, 4  ;;  %s319_s11 = int_to_ptr.vmem [resolvable:$false] %s318_s11 }
  0x3b   : > { %s320_s10 = scalar_lea.vmem %s319_s11, 256  ;;  %p321_p3 = scmp.lt.s32.totalorder %s157_s29, %s319_s11 }
  0x3c   : > { %p317_p1 = pneg %p316_p13  ;;  %p322_p5 = scmp.lt.s32.totalorder %s320_s10, %s314_s4 }
  0x3e   : > { %p323_p8 = por %p322_p5, %p321_p3 }
  0x40   : > { %p324_p10 = pnand %p323_p8, %p317_p1 }
  0xa7   : > { %v134_v1 = vpop.permute.xlu0 %133 }
  0xab   : > { %v136_v3 = vpop.permute.xlu0 %135 }
  0xac   : > { %v137_v4 = vadd.f32 %v136_v3, %v134_v1 }
  0xae   : > { %v139_v5 = vsub.f32 %v137_v4, %v138_v2 }
  0xb0   : > { %v140_v6 = vmul.f32 16129.0, %v139_v5 }
  0xb2   : > { %141 = vst [vmem:[%s131_s28] sm:$0xff] %v140_v6 }
  0xb3   : > { %327 = shalt.err (!%p324_p10)
}
  0xb4   : > { %s328_s13 = scalar_lea.hbm %s154_s2, 128  ;;  %s332_s20 = scalar_lea.hbm %s536_s1, 256 }
  0xb5   : > { %p329_p2 = scmp.ne.s32.totalorder %s154_s2, %s328_s13  ;;  %p333_p7 = scmp.lt.s32.totalorder %s154_s2, %s536_s1 }
  0xb6   : > { %p334_p0 = scmp.lt.s32.totalorder %s332_s20, %s328_s13 }
  0xb7   : > { %p330_p4 = pnand %p329_p2, %p547_p12 }
  0xb8   : > { %p335_p6 = por %p334_p0, %p333_p7 }
  0xb9   : > { %p331_p9 = pneg %p330_p4 }
  0xbb   : > { %p336_p11 = pnand %p335_p6, %p331_p9 }
  0xbd   : > { %339 = shalt.err (!%p336_p11)
}
  0xbe   : > { %240 = dma.vmem_to_hbm [thread:$0]  (%p547_p12), %s157_s29, 128, %s154_s2, %s143_s3  }
  0xbf PF: > { %s168_s23 = sand.u32 1, %s366_s6   ;;  %p548_p13 = scmp.ne.s32.totalorder %s542_s19, 0 }
  0xc0   : > { %p549_p1 = scmp.ge.s32.totalorder %s378_s9, 2  ;;  %s169_s24 = scalar_lea.sflag [#allocation4], %s168_s23 }
  0xc2   : > { %p247_p3 = pnand %p549_p1, %p548_p13 }
  0xc4   : > { %p248_p5 = pneg %p247_p3 }
  0xc6   : > { %361 = dma.done.wait (%p248_p5), %s169_s24, 128  }
  0xc7   : > { %363 = vsyncadd (%p248_p5), %s169_s24, 4294967168  ;;  %p14_p8 = scmp.ge.s32.totalorder %s419_s12, 4   ;;  %s550_s6 = smov %s370_s7 }
  0xc8   : > { %s551_s7 = smov %s374_s8  ;;  %s552_s8 = smov %s431_s15 }
  0xc9   : > { %s553_s9 = smov %s419_s12  ;;  %16 = sbr.rel (!%p14_p8) target bundleno = 5 (0x5), region = 69 }
  0xce   :  { %174 = vsyncpa [#allocation3], 1 }
  0xcf   :  { %176 = vsyncpa [#allocation3 + $0x1], 1 }
  0xd0   :  { %177 = vsyncpa [#allocation4], 1 }
  0xd1   :  { %179 = vsyncpa [#allocation4 + $0x1], 1 }

</bundles_post_ra>
